<compile_context>
chip_gen: v6e
topology: v6e:2x2x1
jax: 0.10.0
libtpu: 0.0.40
codegen_flags: <defaults>
</compile_context>

<pallas_src>
import functools

import jax
import jax.numpy as jnp
from jax import lax
from jax.experimental import pallas as pl
from jax.experimental.pallas import tpu as pltpu


def _dwconv_bn_act_kernel(x_ref, w_ref, shift_ref, o_ref, xpad_ref, *,
                          K, stride, H, W, pad, Hout, Wout, act):
    # x_ref:     (1, TC, H, W)        unpadded NCHW channel slab
    # w_ref:     (TC, K, K)           depthwise weights with BN scale folded in
    # shift_ref: (TC, 1, 1)           folded BN shift = beta - mean * gamma/sqrt(var+eps)
    # o_ref:     (1, TC, Hout, Wout)
    # xpad_ref:  (TC, H+2p, W+2p)     f32 VMEM scratch holding the zero-padded slab
    TC = xpad_ref.shape[0]

    # Zero-pad inside the kernel (pure VMEM traffic; no extra HBM round-trip).
    if pad > 0:
        xpad_ref[...] = jnp.zeros_like(xpad_ref)
    xpad_ref[:, pad:pad + H, pad:pad + W] = x_ref[0].astype(jnp.float32)

    w = w_ref[...].astype(jnp.float32)                       # (TC, K, K), tiny
    acc = jnp.zeros((TC, Hout, Wout), jnp.float32)
    h_span = (Hout - 1) * stride + 1
    w_span = (Wout - 1) * stride + 1

    # Depthwise conv: K*K shifted taps, each a static slice of the padded VMEM ref.
    for kh in range(K):
        for kw in range(K):
            tap = xpad_ref[:, kh:kh + h_span, kw:kw + w_span]
            if stride != 1:
                # TODO(synk): for stride>1 an even/odd column decomposition would avoid
                # the strided value-slice on the lane axis.
                tap = tap[:, ::stride, ::stride]
            acc = acc + tap * w[:, kh:kh + 1, kw:kw + 1]

    y = acc + shift_ref[...]                                  # (TC,1,1) broadcast
    if act == 'SiLU':        # case-sensitive, mirrors the PyTorch module
        y = y * jax.nn.sigmoid(y)
    else:                    # ReLU (module default)
        y = jnp.maximum(y, 0.0)
    o_ref[0] = y.astype(o_ref.dtype)


def conv_bn_act(x_nchw, w_oihw, gamma, beta, running_mean, running_var, *,
                stride=1, act='relu', eps=1e-5):
    N, C, H, W = x_nchw.shape
    K = w_oihw.shape[-1]
    assert K % 2 == 1, "odd kernel size expected ('same' padding semantics)"
    pad = K // 2
    Hout = (H + 2 * pad - K) // stride + 1
    Wout = (W + 2 * pad - K) // stride + 1
    Hp, Wp = H + 2 * pad, W + 2 * pad

    # Fold inference BN into the depthwise weights (conv is per-channel linear).
    inv = (gamma.astype(jnp.float32) /
           jnp.sqrt(running_var.astype(jnp.float32) + eps))                    # (C,)
    w_scaled = (w_oihw[:, 0, :, :].astype(jnp.float32) * inv[:, None, None])   # (C,K,K)
    shift = (beta.astype(jnp.float32) -
             running_mean.astype(jnp.float32) * inv).reshape(C, 1, 1)

    # Channel-block size: largest divisor of C whose padded f32 slab stays small,
    # so double-buffered blocks are far under VMEM on every generation while still
    # leaving many grid steps for DMA/compute overlap.
    budget = 2 * 1024 * 1024
    TC = 1
    for d in range(1, C + 1):
        if C % d == 0 and d * Hp * Wp * 4 <= budget:
            TC = d

    kernel = functools.partial(
        _dwconv_bn_act_kernel, K=K, stride=stride, H=H, W=W, pad=pad,
        Hout=Hout, Wout=Wout, act=act)

    return pl.pallas_call(
        kernel,
        out_shape=jax.ShapeDtypeStruct((N, C, Hout, Wout), x_nchw.dtype),
        grid_spec=pltpu.PrefetchScalarGridSpec(
            num_scalar_prefetch=0,
            grid=(N, C // TC),
            in_specs=[
                pl.BlockSpec((1, TC, H, W), lambda n, cb: (n, cb, 0, 0)),
                pl.BlockSpec((TC, K, K), lambda n, cb: (cb, 0, 0)),
                pl.BlockSpec((TC, 1, 1), lambda n, cb: (cb, 0, 0)),
            ],
            out_specs=pl.BlockSpec((1, TC, Hout, Wout), lambda n, cb: (n, cb, 0, 0)),
            scratch_shapes=[pltpu.VMEM((TC, Hp, Wp), jnp.float32)],
        ),
        compiler_params=pltpu.CompilerParams(
            dimension_semantics=("parallel", "parallel")),
    )(x_nchw, w_scaled, shift)


def _reference(x_nchw, w_oihw, gamma, beta, mean, var, *, stride=1, eps=1e-5):
    C = x_nchw.shape[1]
    K = w_oihw.shape[-1]
    pad = K // 2
    y = lax.conv_general_dilated(
        x_nchw.astype(jnp.float32), w_oihw.astype(jnp.float32),
        window_strides=(stride, stride),
        padding=((pad, pad), (pad, pad)),
        dimension_numbers=('NCHW', 'OIHW', 'NCHW'),
        feature_group_count=C,
    )
    inv = gamma / jnp.sqrt(var + eps)
    y = y * inv[None, :, None, None] + (beta - mean * inv)[None, :, None, None]
    return jnp.maximum(y, 0.0)


if __name__ == "__main__":
    key = jax.random.PRNGKey(0)
    k_x, k_w, k_g, k_b, k_m, k_v = jax.random.split(key, 6)

    # Module config: in_channel == out_channel (required by the original module),
    # kernel=3, stride=1, act='relu'.
    N, C, H, W = 2, 4, 16, 16
    K, stride = 3, 1

    x = jax.random.normal(k_x, (N, C, H, W), dtype=jnp.float32)
    # Depthwise Conv2d weight shape in PyTorch: (C, 1, K, K), no bias.
    w = jax.random.normal(k_w, (C, 1, K, K), dtype=jnp.float32) * 0.1
    gamma = jax.random.uniform(k_g, (C,), minval=0.5, maxval=1.5)
    beta = jax.random.normal(k_b, (C,)) * 0.1
    running_mean = jax.random.normal(k_m, (C,)) * 0.1
    running_var = jax.random.uniform(k_v, (C,), minval=0.5, maxval=1.5)

    out = conv_bn_act(x, w, gamma, beta, running_mean, running_var,
                      stride=stride, act='relu')
    out = jax.block_until_ready(out)

    ref = _reference(x, w, gamma, beta, running_mean, running_var, stride=stride)
    assert out.shape == (N, C, H, W)
    assert jnp.allclose(out, ref, atol=1e-4, rtol=1e-4), "mismatch vs reference"
    print("KERNEL_OK")
</pallas_src>

<mosaic_0001>
module attributes {stable_mosaic.version = 11 : i64} {
  func.func @_dwconv_bn_act_kernel(%arg0: i32, %arg1: i32, %arg2: memref<1x4x16x16xf32, #tpu.memory_space<vmem>>, %arg3: memref<4x3x3xf32, #tpu.memory_space<vmem>>, %arg4: memref<4x1x1xf32, #tpu.memory_space<vmem>>, %arg5: memref<1x4x16x16xf32, #tpu.memory_space<vmem>>, %arg6: memref<4x18x18xf32, #tpu.memory_space<vmem>>) attributes {dimension_semantics = [#tpu.dimension_semantics<parallel>, #tpu.dimension_semantics<parallel>], iteration_bounds = array<i64: 2, 1>, scalar_prefetch = 0 : i64, scratch_operands = 1 : i64, tpu.core_type = #tpu.core_type<tc>, window_params = [{transform_indices = @transform_0, window_bounds = array<i64: 1, 4, 16, 16>}, {transform_indices = @transform_1, window_bounds = array<i64: 4, 3, 3>}, {transform_indices = @transform_2, window_bounds = array<i64: 4, 1, 1>}, {transform_indices = @transform_3, window_bounds = array<i64: 1, 4, 16, 16>}]} {
    %cst = arith.constant 0.000000e+00 : f32
    %0 = vector.broadcast %cst : f32 to vector<4x18x18xf32>
    %c0 = arith.constant 0 : index
    %c0_0 = arith.constant 0 : index
    %c0_1 = arith.constant 0 : index
    %1 = vector.load %arg6[%c0, %c0_0, %c0_1] : memref<4x18x18xf32, #tpu.memory_space<vmem>>, vector<4x18x18xf32>
    tpu.vector_store %arg6[%c0, %c0_0, %c0_1], %0 {strides = array<i32>} : memref<4x18x18xf32, #tpu.memory_space<vmem>>, vector<4x18x18xf32>,
    %c0_2 = arith.constant 0 : index
    %c0_3 = arith.constant 0 : index
    %c0_4 = arith.constant 0 : index
    %c0_5 = arith.constant 0 : index
    %2 = vector.load %arg2[%c0_2, %c0_3, %c0_4, %c0_5] : memref<1x4x16x16xf32, #tpu.memory_space<vmem>>, vector<1x4x16x16xf32>
    %3 = vector.shape_cast %2 : vector<1x4x16x16xf32> to vector<4x16x16xf32>
    %c0_6 = arith.constant 0 : index
    %c1 = arith.constant 1 : index
    %c1_7 = arith.constant 1 : index
    %4 = vector.load %arg6[%c0_6, %c1, %c1_7] : memref<4x18x18xf32, #tpu.memory_space<vmem>>, vector<4x16x16xf32>
    tpu.vector_store %arg6[%c0_6, %c1, %c1_7], %3 {strides = array<i32>} : memref<4x18x18xf32, #tpu.memory_space<vmem>>, vector<4x16x16xf32>,
    %c0_8 = arith.constant 0 : index
    %c0_9 = arith.constant 0 : index
    %c0_10 = arith.constant 0 : index
    %5 = vector.load %arg3[%c0_8, %c0_9, %c0_10] : memref<4x3x3xf32, #tpu.memory_space<vmem>>, vector<4x3x3xf32>
    %cst_11 = arith.constant 0.000000e+00 : f32
    %6 = vector.broadcast %cst_11 : f32 to vector<4x16x16xf32>
    %c0_12 = arith.constant 0 : index
    %c0_13 = arith.constant 0 : index
    %c0_14 = arith.constant 0 : index
    %7 = vector.load %arg6[%c0_12, %c0_13, %c0_14] : memref<4x18x18xf32, #tpu.memory_space<vmem>>, vector<4x16x16xf32>
    %8 = vector.extract_strided_slice %5 {offsets = [0, 0, 0], sizes = [4, 1, 1], strides = [1, 1, 1]} : vector<4x3x3xf32> to vector<4x1x1xf32>
    %9 = vector.broadcast %8 : vector<4x1x1xf32> to vector<4x16x16xf32>
    %10 = arith.mulf %7, %9 : vector<4x16x16xf32>
    %11 = arith.addf %6, %10 : vector<4x16x16xf32>
    %c0_15 = arith.constant 0 : index
    %c0_16 = arith.constant 0 : index
    %c1_17 = arith.constant 1 : index
    %12 = vector.load %arg6[%c0_15, %c0_16, %c1_17] : memref<4x18x18xf32, #tpu.memory_space<vmem>>, vector<4x16x16xf32>
    %13 = vector.extract_strided_slice %5 {offsets = [0, 0, 1], sizes = [4, 1, 1], strides = [1, 1, 1]} : vector<4x3x3xf32> to vector<4x1x1xf32>
    %14 = vector.broadcast %13 : vector<4x1x1xf32> to vector<4x16x16xf32>
    %15 = arith.mulf %12, %14 : vector<4x16x16xf32>
    %16 = arith.addf %11, %15 : vector<4x16x16xf32>
    %c0_18 = arith.constant 0 : index
    %c0_19 = arith.constant 0 : index
    %c2 = arith.constant 2 : index
    %17 = vector.load %arg6[%c0_18, %c0_19, %c2] : memref<4x18x18xf32, #tpu.memory_space<vmem>>, vector<4x16x16xf32>
    %18 = vector.extract_strided_slice %5 {offsets = [0, 0, 2], sizes = [4, 1, 1], strides = [1, 1, 1]} : vector<4x3x3xf32> to vector<4x1x1xf32>
    %19 = vector.broadcast %18 : vector<4x1x1xf32> to vector<4x16x16xf32>
    %20 = arith.mulf %17, %19 : vector<4x16x16xf32>
    %21 = arith.addf %16, %20 : vector<4x16x16xf32>
    %c0_20 = arith.constant 0 : index
    %c1_21 = arith.constant 1 : index
    %c0_22 = arith.constant 0 : index
    %22 = vector.load %arg6[%c0_20, %c1_21, %c0_22] : memref<4x18x18xf32, #tpu.memory_space<vmem>>, vector<4x16x16xf32>
    %23 = vector.extract_strided_slice %5 {offsets = [0, 1, 0], sizes = [4, 1, 1], strides = [1, 1, 1]} : vector<4x3x3xf32> to vector<4x1x1xf32>
    %24 = vector.broadcast %23 : vector<4x1x1xf32> to vector<4x16x16xf32>
    %25 = arith.mulf %22, %24 : vector<4x16x16xf32>
    %26 = arith.addf %21, %25 : vector<4x16x16xf32>
    %c0_23 = arith.constant 0 : index
    %c1_24 = arith.constant 1 : index
    %c1_25 = arith.constant 1 : index
    %27 = vector.load %arg6[%c0_23, %c1_24, %c1_25] : memref<4x18x18xf32, #tpu.memory_space<vmem>>, vector<4x16x16xf32>
    %28 = vector.extract_strided_slice %5 {offsets = [0, 1, 1], sizes = [4, 1, 1], strides = [1, 1, 1]} : vector<4x3x3xf32> to vector<4x1x1xf32>
    %29 = vector.broadcast %28 : vector<4x1x1xf32> to vector<4x16x16xf32>
    %30 = arith.mulf %27, %29 : vector<4x16x16xf32>
    %31 = arith.addf %26, %30 : vector<4x16x16xf32>
    %c0_26 = arith.constant 0 : index
    %c1_27 = arith.constant 1 : index
    %c2_28 = arith.constant 2 : index
    %32 = vector.load %arg6[%c0_26, %c1_27, %c2_28] : memref<4x18x18xf32, #tpu.memory_space<vmem>>, vector<4x16x16xf32>
    %33 = vector.extract_strided_slice %5 {offsets = [0, 1, 2], sizes = [4, 1, 1], strides = [1, 1, 1]} : vector<4x3x3xf32> to vector<4x1x1xf32>
    %34 = vector.broadcast %33 : vector<4x1x1xf32> to vector<4x16x16xf32>
    %35 = arith.mulf %32, %34 : vector<4x16x16xf32>
    %36 = arith.addf %31, %35 : vector<4x16x16xf32>
    %c0_29 = arith.constant 0 : index
    %c2_30 = arith.constant 2 : index
    %c0_31 = arith.constant 0 : index
    %37 = vector.load %arg6[%c0_29, %c2_30, %c0_31] : memref<4x18x18xf32, #tpu.memory_space<vmem>>, vector<4x16x16xf32>
    %38 = vector.extract_strided_slice %5 {offsets = [0, 2, 0], sizes = [4, 1, 1], strides = [1, 1, 1]} : vector<4x3x3xf32> to vector<4x1x1xf32>
    %39 = vector.broadcast %38 : vector<4x1x1xf32> to vector<4x16x16xf32>
    %40 = arith.mulf %37, %39 : vector<4x16x16xf32>
    %41 = arith.addf %36, %40 : vector<4x16x16xf32>
    %c0_32 = arith.constant 0 : index
    %c2_33 = arith.constant 2 : index
    %c1_34 = arith.constant 1 : index
    %42 = vector.load %arg6[%c0_32, %c2_33, %c1_34] : memref<4x18x18xf32, #tpu.memory_space<vmem>>, vector<4x16x16xf32>
    %43 = vector.extract_strided_slice %5 {offsets = [0, 2, 1], sizes = [4, 1, 1], strides = [1, 1, 1]} : vector<4x3x3xf32> to vector<4x1x1xf32>
    %44 = vector.broadcast %43 : vector<4x1x1xf32> to vector<4x16x16xf32>
    %45 = arith.mulf %42, %44 : vector<4x16x16xf32>
    %46 = arith.addf %41, %45 : vector<4x16x16xf32>
    %c0_35 = arith.constant 0 : index
    %c2_36 = arith.constant 2 : index
    %c2_37 = arith.constant 2 : index
    %47 = vector.load %arg6[%c0_35, %c2_36, %c2_37] : memref<4x18x18xf32, #tpu.memory_space<vmem>>, vector<4x16x16xf32>
    %48 = vector.extract_strided_slice %5 {offsets = [0, 2, 2], sizes = [4, 1, 1], strides = [1, 1, 1]} : vector<4x3x3xf32> to vector<4x1x1xf32>
    %49 = vector.broadcast %48 : vector<4x1x1xf32> to vector<4x16x16xf32>
    %50 = arith.mulf %47, %49 : vector<4x16x16xf32>
    %51 = arith.addf %46, %50 : vector<4x16x16xf32>
    %c0_38 = arith.constant 0 : index
    %c0_39 = arith.constant 0 : index
    %c0_40 = arith.constant 0 : index
    %52 = vector.load %arg4[%c0_38, %c0_39, %c0_40] : memref<4x1x1xf32, #tpu.memory_space<vmem>>, vector<4x1x1xf32>
    %53 = vector.broadcast %52 : vector<4x1x1xf32> to vector<4x16x16xf32>
    %54 = arith.addf %51, %53 : vector<4x16x16xf32>
    %cst_41 = arith.constant 0.000000e+00 : f32
    %55 = vector.broadcast %cst_41 : f32 to vector<4x16x16xf32>
    %56 = arith.maximumf %54, %55 : vector<4x16x16xf32>
    %c0_42 = arith.constant 0 : index
    %c0_43 = arith.constant 0 : index
    %c0_44 = arith.constant 0 : index
    %c0_45 = arith.constant 0 : index
    %57 = vector.load %arg5[%c0_42, %c0_43, %c0_44, %c0_45] : memref<1x4x16x16xf32, #tpu.memory_space<vmem>>, vector<1x4x16x16xf32>
    %58 = vector.shape_cast %57 : vector<1x4x16x16xf32> to vector<4x16x16xf32>
    %59 = vector.shape_cast %56 : vector<4x16x16xf32> to vector<1x4x16x16xf32>
    tpu.vector_store %arg5[%c0_42, %c0_43, %c0_44, %c0_45], %59 {strides = array<i32>} : memref<1x4x16x16xf32, #tpu.memory_space<vmem>>, vector<1x4x16x16xf32>,
    return
  }
  func.func @transform_0(%arg0: i32, %arg1: i32) -> (i32, i32, i32, i32) {
    %c0_i32 = arith.constant 0 : i32
    %c0_i32_0 = arith.constant 0 : i32
    %c0_i32_1 = arith.constant 0 : i32
    return %arg0, %arg1, %c0_i32, %c0_i32_0 : i32, i32, i32, i32
  }
  func.func @transform_1(%arg0: i32, %arg1: i32) -> (i32, i32, i32) {
    %c0_i32 = arith.constant 0 : i32
    %c0_i32_0 = arith.constant 0 : i32
    %c0_i32_1 = arith.constant 0 : i32
    return %arg1, %c0_i32, %c0_i32_0 : i32, i32, i32
  }
  func.func @transform_2(%arg0: i32, %arg1: i32) -> (i32, i32, i32) {
    %c0_i32 = arith.constant 0 : i32
    %c0_i32_0 = arith.constant 0 : i32
    %c0_i32_1 = arith.constant 0 : i32
    return %arg1, %c0_i32, %c0_i32_0 : i32, i32, i32
  }
  func.func @transform_3(%arg0: i32, %arg1: i32) -> (i32, i32, i32, i32) {
    %c0_i32 = arith.constant 0 : i32
    %c0_i32_0 = arith.constant 0 : i32
    %c0_i32_1 = arith.constant 0 : i32
    return %arg0, %arg1, %c0_i32, %c0_i32_0 : i32, i32, i32, i32
  }
}

</mosaic_0001>

<bundles_post_ra>
// kernel: tpu_custom_call.1
= control target key start
LH: loop header
LB: loop body
LE: loop exit
PB: predicated region body
PF: predicated region fallthrough
CT: control target
= control target key end

     0   :  { %8 = vsyncpa [#allocation4], 0  ;;  %s1927_s0 = inlined_call_operand.hbm [shape: f32[2,4,16,16], index: 0, kind: input, shape index: {}]   ;;  %s1928_s1 = inlined_call_operand.vmem [shape: f32[4,3,3], index: 1, kind: input, shape index: {}]   ;;  %s1929_s2 = inlined_call_operand.vmem [shape: f32[4,1,1], index: 2, kind: input, shape index: {}]   ;;  %s1930_s3 = inlined_call_operand.hbm [shape: f32[2,4,16,16], index: 3, kind: output, shape index: {}]  }
   0x1   :  { %10 = vsyncpa [#allocation4 + $0x1], 0 }
   0x2   :  { %11 = vsyncpa [#allocation5], 0 }
   0x3   :  { %13 = vsyncpa [#allocation5 + $0x1], 0  ;;  %s1351_s12 = smov 0   ;;  %s1353_s13 = smov 0  }
   0x4   :  { %s1355_s14 = smov 0   ;;  %s1357_s15 = smov 0  }
   0x5   :  { %s1359_s16 = smov 0   ;;  %s1361_s17 = smov 0  }
   0x6 LB: > { %s1042_s18 = sadd.s32 4294967295, %s1318_s17   ;;  %s1043_s19 = sadd.s32 4294967294, %s1318_s17   ;;  %s1318_s17 = sphi %s1361_s17, %s19_s17   ;;  %s1314_s16 = sphi %s1359_s16, %s1941_s16   ;;  %s1310_s15 = sphi %s1357_s15, %s1940_s15   ;;  %s1306_s14 = sphi %s1355_s14, %s1939_s14   ;;  %s1302_s13 = sphi %s1353_s13, %s1938_s13   ;;  %s1298_s12 = sphi %s1351_s12, %s1937_s12  }
   0x7   : > { %s31_s20 = sadd.s32 1, %s1314_s16  ;;  %s40_s21 = sadd.s32 1, %s1306_s14 }
   0x8   : > { %p33_p0 = scmp.ge.s32.totalorder %s31_s20, 2  ;;  %p47_p1 = scmp.ne.s32.totalorder %s1306_s14, %s1302_s13 }
   0x9   : > { %p48_p2 = scmp.eq.s32.totalorder %s1318_s17, 0  ;;  %p53_p3 = scmp.ne.s32.totalorder %s1302_s13, %s1298_s12 }
   0xa   : > { %s1943_s20 = smov (%p33_p0, %s31_s20), 0  ;;  %p54_p5 = scmp.eq.s32.totalorder %s1042_s18, 0 }
   0xb   : > { %p1392_p4 = por %p48_p2, %p47_p1  ;;  %s35_s23 = ssub.s32 %s1314_s16, %s1943_s20 }
   0xc   : > { %p131_p6 = scmp.eq.s32.totalorder %s1042_s18, 1  ;;  %p38_p7 = scmp.eq.s32.totalorder %s35_s23, 0 }
   0xd   : > { %p1398_p8 = por %p54_p5, %p53_p3  ;;  %p137_p10 = scmp.eq.s32.totalorder %s1043_s19, 1 }
   0xe   : > { %p1402_p9 = por %p131_p6, %p47_p1  ;;  %p1149_p13 = scmp.lt.s32.totalorder %s1318_s17, 2 }
   0xf   : > { %s1407_s26 = scalar_select %p38_p7, %s1306_s14, %s40_s21  }
  0x10   : > { %p1409_p11 = por %p137_p10, %p53_p3  ;;  %s174_s28 = sand.u32 1, %s1306_s14  }
  0x11   : > { %s1048_s29 = sshll.u32 %s174_s28, 6  ;;  %s1063_s30 = sshll.u32 %s1314_s16, 10 }
  0x12   : > { %s187_s6 = scalar_lea.hbm %s1927_s0, %s1063_s30  ;;  %s178_s7 = scalar_lea.vmem [#allocation3], %s1048_s29 }
  0x13   : > { %s188_s8 = sshll.u32 %s178_s7, 4  ;;  %p1422_p0 = pnand %p1149_p13, %p1392_p4  ;;  %s189_s8 = int_to_ptr.vmem [resolvable:$true] %s188_s8 }
  0x14   : > { %p1051_p1 = scmp.ge.s32.totalorder %s1318_s17, 1  ;;  %s175_s10 = scalar_lea.sflag [#allocation4], %s174_s28 }
  0x15   : > { %p1212_p2 = pneg %p1422_p0  ;;  %s1223_s11 = scalar_lea.vmem %s189_s8, 1024 }
  0x16   : > { %p1224_p3 = scmp.ne.s32.totalorder %s189_s8, %s1223_s11  ;;  %s1320_s18 = smov [#allocation3]  }
  0x17   : > { %s1228_s19 = sshll.u32 %s1320_s18, 4  ;;  %s1229_s19 = int_to_ptr.vmem [resolvable:$false] %s1228_s19 }
  0x18   : > { %p1226_p5 = pnand %p1224_p3, %p1212_p2  ;;  %s1230_s21 = scalar_lea.vmem %s1229_s19, 2048 }
  0x19   : > { %p1231_p7 = scmp.lt.s32.totalorder %s189_s8, %s1229_s19  ;;  %p1232_p10 = scmp.lt.s32.totalorder %s1230_s21, %s1223_s11 }
  0x1a   : > { %p1227_p6 = pneg %p1226_p5 }
  0x1b   : > { %p1233_p12 = por %p1232_p10, %p1231_p7 }
  0x1d   : > { %p1234_p4 = pnand %p1233_p12, %p1227_p6 }
  0x1f   : > { %1237 = shalt.err (!%p1234_p4)
}
  0x20   : > { %s1321_s22 = smov 128   ;;  %s1322_s23 = smov 8  }
  0x21   : > { %1144 = dma.hbm_to_vmem [thread:$0]  (!%p1422_p0), %s187_s6, 1024, %s189_s8, %s175_s10, %s1321_s22, %s1321_s22, %s1322_s23  }
  0x22   : > { %p196_p13 = scmp.lt.s32.totalorder %s1318_s17, 3 }
  0x24   : > { %p197_p2 = pnand %p1051_p1, %p196_p13 }
  0x25   : > { %s1435_s28 = sand.u32 (!%p197_p2), 1, %s1302_s13  }
  0x26   : > { %200 = sbr.rel (%p197_p2) target bundleno = 447 (0x1bf), region = 32  ;;  %s1052_s29 = sshll.u32 (!%p197_p2), %s1435_s28, 6 }
  0x27   : > { %s203_s30 = scalar_lea.sflag (!%p197_p2), [#allocation4], %s1435_s28  ;;  %s1441_s4 = scalar_lea.vmem (!%p197_p2), [#allocation3], %s1052_s29 }
  0x2b   : > { %1289 = dma.done.wait (%p1398_p8), %s203_s30, 1024  }
  0x2c   : > { %1291 = vsyncadd (%p1398_p8), %s203_s30, 4294966272  ;;  %v316_v0 = vld [vmem:[%s1928_s1 + $0x8] sm:$0x7]  ;;  %v314_v1 = vld [vmem:[%s1928_s1] sm:$0x7]  ;;  %s1323_s9 = smov 127  }
  0x2d   : > { %362 = vrot.lane.b32.xlu1 %v316_v0, %s1323_s9  ;;  %358 = vrot.lane.b32.xlu0 %v314_v1, %s1323_s9  ;;  %v315_v2 = vld [vmem:[%s1928_s1 + $0x4] sm:$0x7]  ;;  %1065 = vpush %v314_v1  ;;  %v317_v3 = vld [vmem:[%s1928_s1 + $0xc] sm:$0x7]  ;;  %s1324_s19 = smov 126   ;;  %v1469_v5 = vrot.slane %v314_v1, 1 }
  0x2e   : > { %1067 = vpush %v315_v2  ;;  %v1467_v4 = vrot.slane %v315_v2, 1  ;;  %v1475_v6 = vrot.slane %v317_v3, 1  ;;  %v1477_v7 = vrot.slane %v316_v0, 1  ;;  %v1325_v8 = vmov 0   ;;  %v266_v14 = vld [vmem:[%s1441_s4 + $0x8] sm:$0xff]  ;;  %v265_v15 = vld [vmem:[%s1441_s4] sm:$0xff] }
  0x2f   : > { %1069 = vpush %v316_v0  ;;  %1209 = vset.pattern.permute.xlu1 %v1325_v8  ;;  %1208 = vset.pattern.permute.xlu0 %v1325_v8  ;;  %v1491_v9 = vrot.slane %v315_v2, 2  ;;  %v1493_v10 = vrot.slane %v314_v1, 2  ;;  %v1495_v11 = vrot.slane %v317_v3, 2  ;;  %v1501_v12 = vrot.slane %v316_v0, 2  ;;  %s1327_s21 = smov 1   ;;  %v268_v16 = vld [vmem:[%s1441_s4 + $0x18] sm:$0xff] }
  0x30   : > { %1071 = vpush %v317_v3  ;;  %vm251_vm0 = vcmask 146432   ;;  %vm254_vm1 = vcmask 140288   ;;  %v1326_v13 = vmov 0.0   ;;  %v267_v17 = vld [vmem:[%s1441_s4 + $0x10] sm:$0xff]  ;;  %v270_v18 = vld [vmem:[%s1441_s4 + $0x28] sm:$0xff]  ;;  %v269_v19 = vld [vmem:[%s1441_s4 + $0x20] sm:$0xff] }
  0x31   : > { %364 = vrot.lane.b32.xlu1 %v317_v3, %s1323_s9  ;;  %360 = vrot.lane.b32.xlu0 %v315_v2, %s1323_s9  ;;  %253 = vst.msk [vmem:[#allocation2 + $0x8] sm:$0xff] %vm251_vm0, %v1326_v13  ;;  %252 = vst.msk [vmem:[#allocation2] sm:$0xff] %vm251_vm0, %v1326_v13  ;;  %v272_v20 = vld [vmem:[%s1441_s4 + $0x38] sm:$0xff]  ;;  %v271_v21 = vld [vmem:[%s1441_s4 + $0x30] sm:$0xff]  ;;  %vm305_vm2 = vcmask 138248   ;;  %vm902_vm3 = vcmask 130048  }
  0x32   : > { %255 = vst.msk [vmem:[#allocation2 + $0x10] sm:$0x3] %vm254_vm1, %v1326_v13  ;;  %258 = vst.msk [vmem:[#allocation2 + $0x28] sm:$0x3] %vm254_vm1, %v1326_v13  ;;  %v1055_v22 = vld [vmem:[%s1929_s2 + $0x1] ss:$0 sm:$0xff] }
  0x33   : > { %256 = vst.msk [vmem:[#allocation2 + $0x18] sm:$0xff] %vm251_vm0, %v1326_v13  ;;  %257 = vst.msk [vmem:[#allocation2 + $0x20] sm:$0xff] %vm251_vm0, %v1326_v13  ;;  %v1054_v23 = vld [vmem:[%s1929_s2] ss:$0 sm:$0xff]  ;;  %v1056_v24 = vld [vmem:[%s1929_s2 + $0x2] ss:$0 sm:$0xff] }
  0x34   : > { %259 = vst.msk [vmem:[#allocation2 + $0x30] sm:$0xff] %vm251_vm0, %v1326_v13  ;;  %260 = vst.msk [vmem:[#allocation2 + $0x38] sm:$0xff] %vm251_vm0, %v1326_v13  ;;  %v1057_v25 = vld [vmem:[%s1929_s2 + $0x3] ss:$0 sm:$0xff] }
  0x35   : > { %428 = vrot.lane.b32.xlu1 %v315_v2, %s1324_s19  ;;  %426 = vrot.lane.b32.xlu0 %v314_v1, %s1324_s19  ;;  %261 = vst.msk [vmem:[#allocation2 + $0x40] sm:$0x3] %vm254_vm1, %v1326_v13  ;;  %264 = vst.msk [vmem:[#allocation2 + $0x58] sm:$0x3] %vm254_vm1, %v1326_v13 }
  0x36   : > { %262 = vst.msk [vmem:[#allocation2 + $0x48] sm:$0xff] %vm251_vm0, %v1326_v13  ;;  %263 = vst.msk [vmem:[#allocation2 + $0x50] sm:$0xff] %vm251_vm0, %v1326_v13 }
  0x39   : > { %432 = vrot.lane.b32.xlu1 %v317_v3, %s1324_s19  ;;  %430 = vrot.lane.b32.xlu0 %v316_v0, %s1324_s19 }
  0x3d   : > { %536 = vrot.lane.b32.xlu1 %v1467_v4, %s1323_s9  ;;  %534 = vrot.lane.b32.xlu0 %v1469_v5, %s1323_s9 }
  0x41   : > { %540 = vrot.lane.b32.xlu1 %v1475_v6, %s1323_s9  ;;  %538 = vrot.lane.b32.xlu0 %v1477_v7, %s1323_s9 }
  0x45   : > { %604 = vrot.lane.b32.xlu1 %v1467_v4, %s1324_s19  ;;  %602 = vrot.lane.b32.xlu0 %v1469_v5, %s1324_s19 }
  0x49   : > { %608 = vrot.lane.b32.xlu1 %v1475_v6, %s1324_s19  ;;  %606 = vrot.lane.b32.xlu0 %v1477_v7, %s1324_s19 }
  0x4d   : > { %712 = vrot.lane.b32.xlu1 %v1491_v9, %s1323_s9  ;;  %710 = vrot.lane.b32.xlu0 %v1493_v10, %s1323_s9 }
  0x51   : > { %716 = vrot.lane.b32.xlu1 %v1495_v11, %s1323_s9  ;;  %714 = vrot.lane.b32.xlu0 %v1501_v12, %s1323_s9 }
  0x55   : > { %780 = vrot.lane.b32.xlu1 %v1491_v9, %s1324_s19  ;;  %778 = vrot.lane.b32.xlu0 %v1493_v10, %s1324_s19 }
  0x59   : > { %784 = vrot.lane.b32.xlu1 %v1495_v11, %s1324_s19  ;;  %782 = vrot.lane.b32.xlu0 %v1501_v12, %s1324_s19 }
  0x5d   : > { %283 = vrot.lane.b32.xlu1 %v266_v14, %s1327_s21  ;;  %281 = vrot.lane.b32.xlu0 %v265_v15, %s1327_s21 }
  0x5e   : > { %s1066_s4 = spop %1065 }
  0x5f   : > { %s1543_s11 = spop %1067  ;;  %v328_v54 = vstv %s1066_s4 }
  0x60   : > { %s1547_s24 = spop %1069 }
  0x61   : > { %287 = vrot.lane.b32.xlu1 %v268_v16, %s1327_s21  ;;  %285 = vrot.lane.b32.xlu0 %v267_v17, %s1327_s21  ;;  %s1549_s18 = spop %1071  ;;  %v336_v14 = vstv %s1547_s24 }
  0x65   : > { %291 = vrot.lane.b32.xlu1 %v270_v18, %s1327_s21  ;;  %289 = vrot.lane.b32.xlu0 %v269_v19, %s1327_s21 }
  0x69   : > { %295 = vrot.lane.b32.xlu1 %v272_v20, %s1327_s21  ;;  %293 = vrot.lane.b32.xlu0 %v271_v21, %s1327_s21 }
  0x6d   : > { %875 = vperm.xlu1 %1209, %v1055_v22   ;;  %871 = vperm.xlu0 %1208, %v1054_v23  }
  0x71   : > { %879 = vperm.xlu1 %1209, %v1056_v24   ;;  %883 = vperm.xlu0 %1208, %v1057_v25  }
  0x9f   : > { %v363_v26 = vpop.permute.xlu1 %362  ;;  %v359_v27 = vpop.permute.xlu0 %358 }
  0xa0   : > { %1073 = vpush %v359_v27 }
  0xa3   : > { %v365_v28 = vpop.permute.xlu1 %364  ;;  %v361_v29 = vpop.permute.xlu0 %360 }
  0xa4   : > { %1075 = vpush %v361_v29 }
  0xa5   : > { %1077 = vpush %v363_v26 }
  0xa6   : > { %1079 = vpush %v365_v28 }
  0xa7   : > { %v429_v30 = vpop.permute.xlu1 %428  ;;  %v427_v31 = vpop.permute.xlu0 %426 }
  0xa8   : > { %1081 = vpush %v427_v31 }
  0xa9   : > { %1083 = vpush %v429_v30 }
  0xab   : > { %v433_v32 = vpop.permute.xlu1 %432  ;;  %v431_v33 = vpop.permute.xlu0 %430 }
  0xac   : > { %1085 = vpush %v431_v33 }
  0xad   : > { %1087 = vpush %v433_v32 }
  0xae   : > { %1089 = vpush %v1469_v5  ;;  %v332_v5 = vstv %s1543_s11 }
  0xaf   : > { %1091 = vpush %v1467_v4  ;;  %v537_v34 = vpop.permute.xlu1 %536  ;;  %v535_v35 = vpop.permute.xlu0 %534 }
  0xb0   : > { %1093 = vpush %v1477_v7 }
  0xb1   : > { %1095 = vpush %v1475_v6 }
  0xb2   : > { %1097 = vpush %v535_v35 }
  0xb3   : > { %1099 = vpush %v537_v34  ;;  %v541_v36 = vpop.permute.xlu1 %540  ;;  %v539_v37 = vpop.permute.xlu0 %538 }
  0xb4   : > { %1101 = vpush %v539_v37 }
  0xb5   : > { %1103 = vpush %v541_v36 }
  0xb7   : > { %v605_v38 = vpop.permute.xlu1 %604  ;;  %v603_v39 = vpop.permute.xlu0 %602 }
  0xb8   : > { %1105 = vpush %v603_v39 }
  0xb9   : > { %1107 = vpush %v605_v38 }
  0xbb   : > { %v609_v40 = vpop.permute.xlu1 %608  ;;  %v607_v41 = vpop.permute.xlu0 %606 }
  0xbc   : > { %1109 = vpush %v607_v41 }
  0xbd   : > { %1111 = vpush %v609_v40 }
  0xbe   : > { %1113 = vpush %v1493_v10 }
  0xbf   : > { %1115 = vpush %v1491_v9  ;;  %v713_v42 = vpop.permute.xlu1 %712  ;;  %v711_v43 = vpop.permute.xlu0 %710 }
  0xc0   : > { %1117 = vpush %v1501_v12 }
  0xc1   : > { %1119 = vpush %v1495_v11 }
  0xc2   : > { %1121 = vpush %v711_v43 }
  0xc3   : > { %1123 = vpush %v713_v42  ;;  %v717_v44 = vpop.permute.xlu1 %716  ;;  %v715_v45 = vpop.permute.xlu0 %714 }
  0xc4   : > { %1125 = vpush %v715_v45 }
  0xc5   : > { %1127 = vpush %v717_v44 }
  0xc7   : > { %v781_v46 = vpop.permute.xlu1 %780  ;;  %v779_v47 = vpop.permute.xlu0 %778 }
  0xc8   : > { %1129 = vpush %v779_v47 }
  0xc9   : > { %1131 = vpush %v781_v46 }
  0xcb   : > { %v785_v48 = vpop.permute.xlu1 %784  ;;  %v783_v49 = vpop.permute.xlu0 %782 }
  0xcc   : > { %1133 = vpush %v783_v49 }
  0xcd   : > { %1135 = vpush %v785_v48 }
  0xcf   : > { %v284_v50 = vpop.permute.xlu1 %283  ;;  %v282_v51 = vpop.permute.xlu0 %281 }
  0xd0   : > { %307 = vst.msk [vmem:[#allocation2 + $0x9] sm:$0xff] %vm305_vm2, %v284_v50  ;;  %306 = vst.msk [vmem:[#allocation2 + $0x1] sm:$0xff] %vm305_vm2, %v282_v51 }
  0xd1   : > { %s1074_s21 = spop %1073 }
  0xd2   : > { %v367_v57 = vstv %s1074_s21 }
  0xd3   : > { %v288_v52 = vpop.permute.xlu1 %287  ;;  %v286_v53 = vpop.permute.xlu0 %285 }
  0xd4   : > { %309 = vst.msk [vmem:[#allocation2 + $0x21] sm:$0xff] %vm305_vm2, %v288_v52  ;;  %308 = vst.msk [vmem:[#allocation2 + $0x19] sm:$0xff] %vm305_vm2, %v286_v53 }
  0xd5   : > { %s1076_s22 = spop %1075 }
  0xd6   : > { %s1557_s23 = spop %1077  ;;  %v370_v2 = vstv %s1076_s22 }
  0xd7   : > { %v1553_v55 = vld [vmem:[#allocation2] sm:$0xff]  ;;  %v1555_v56 = vld [vmem:[#allocation2 + $0x8] sm:$0xff]  ;;  %v292_v58 = vpop.permute.xlu1 %291  ;;  %v290_v59 = vpop.permute.xlu0 %289  ;;  %s1569_s30 = spop %1079  ;;  %v373_v10 = vstv %s1557_s23 }
  0xd8   : > { %v1560_v60 = vmul.f32 %v328_v54, %v1553_v55  ;;  %v1563_v61 = vmul.f32 %v328_v54, %v1555_v56  ;;  %v378_v62 = vmul.f32 %v367_v57, %v1553_v55  ;;  %v379_v63 = vmul.f32 %v367_v57, %v1555_v56  ;;  %311 = vst.msk [vmem:[#allocation2 + $0x39] sm:$0xff] %vm305_vm2, %v292_v58  ;;  %v1603_v13 = vld [vmem:[#allocation2 + $0x1] sm:$0xff]  ;;  %v1606_v15 = vld [vmem:[#allocation2 + $0x9] sm:$0xff] }
  0xd9   : > { %310 = vst.msk [vmem:[#allocation2 + $0x31] sm:$0xff] %vm305_vm2, %v290_v59  ;;  %s1571_s5 = spop %1081  ;;  %v376_v39 = vstv %s1569_s30  ;;  %v1688_v50 = vld [vmem:[#allocation2 + $0x2] sm:$0xff]  ;;  %v1690_v51 = vld [vmem:[#allocation2 + $0xa] sm:$0xff] }
  0xda   : > { %396 = vrot.lane.b32.xlu1 %v379_v63, %s1323_s9  ;;  %394 = vrot.lane.b32.xlu0 %v378_v62, %s1323_s9  ;;  %s1582_s6 = spop %1083  ;;  %v435_v42 = vstv %s1571_s5 }
  0xdb   : > { %v1575_v0 = vld [vmem:[#allocation2 + $0x18] sm:$0xff]  ;;  %v1577_v1 = vld [vmem:[#allocation2 + $0x20] sm:$0xff]  ;;  %v296_v3 = vpop.permute.xlu1 %295  ;;  %v294_v4 = vpop.permute.xlu0 %293  ;;  %v447_v44 = vmul.f32 %v435_v42, %v1555_v56  ;;  %v446_v45 = vmul.f32 %v435_v42, %v1553_v55  ;;  %v438_v46 = vstv %s1582_s6 }
  0xdc   : > { %v380_v6 = vmul.f32 %v370_v2, %v1575_v0  ;;  %v381_v7 = vmul.f32 %v370_v2, %v1577_v1  ;;  %313 = vst.msk [vmem:[#allocation2 + $0x51] sm:$0xff] %vm305_vm2, %v296_v3  ;;  %312 = vst.msk [vmem:[#allocation2 + $0x49] sm:$0xff] %vm305_vm2, %v294_v4  ;;  %v1589_v8 = vmul.f32 %v332_v5, %v1577_v1  ;;  %v1619_v22 = vld [vmem:[#allocation2 + $0x19] sm:$0xff]  ;;  %v1621_v23 = vld [vmem:[#allocation2 + $0x21] sm:$0xff] }
  0xdd   : > { %s1586_s7 = spop %1085  ;;  %v1592_v9 = vmul.f32 %v332_v5, %v1575_v0  ;;  %v449_v47 = vmul.f32 %v438_v46, %v1577_v1  ;;  %v448_v48 = vmul.f32 %v438_v46, %v1575_v0  ;;  %v1699_v55 = vld [vmem:[#allocation2 + $0x1a] sm:$0xff]  ;;  %v1701_v56 = vld [vmem:[#allocation2 + $0x22] sm:$0xff] }
  0xde   : > { %s1594_s8 = spop %1087  ;;  %400 = vrot.lane.b32.xlu1 %v381_v7, %s1323_s9  ;;  %398 = vrot.lane.b32.xlu0 %v380_v6, %s1323_s9  ;;  %v441_v49 = vstv %s1586_s7 }
  0xdf   : > { %s1090_s10 = spop %1089  ;;  %v1610_v18 = vld [vmem:[#allocation2 + $0x39] sm:$0xff] }
  0xe0   : > { %v1599_v11 = vld [vmem:[#allocation2 + $0x30] sm:$0xff]  ;;  %v1601_v12 = vld [vmem:[#allocation2 + $0x38] sm:$0xff]  ;;  %v507_v16 = vstv %s1090_s10  ;;  %s1092_s4 = spop %1091 }
  0xe1   : > { %v1608_v17 = vld [vmem:[#allocation2 + $0x31] sm:$0xff]  ;;  %v383_v19 = vmul.f32 %v373_v10, %v1601_v12  ;;  %v1614_v20 = vmul.f32 %v507_v16, %v1603_v13  ;;  %v1617_v21 = vmul.f32 %v507_v16, %v1606_v15  ;;  %v510_v24 = vstv %s1092_s4  ;;  %s1094_s11 = spop %1093  ;;  %v1713_v0 = vld [vmem:[#allocation2 + $0x3a] sm:$0xff] }
  0xe2   : > { %v382_v25 = vmul.f32 %v373_v10, %v1599_v11  ;;  %v1625_v26 = vmul.f32 %v510_v24, %v1619_v22  ;;  %v1628_v27 = vmul.f32 %v510_v24, %v1621_v23  ;;  %v513_v28 = vstv %s1094_s11  ;;  %s1096_s24 = spop %1095  ;;  %v1711_v63 = vld [vmem:[#allocation2 + $0x32] sm:$0xff] }
  0xe3   : > { %404 = vrot.lane.b32.xlu1 %v383_v19, %s1323_s9  ;;  %v1632_v29 = vmul.f32 %v336_v14, %v1601_v12  ;;  %v1634_v30 = vld [vmem:[#allocation2 + $0x50] sm:$0xff]  ;;  %v1637_v31 = vmul.f32 %v513_v28, %v1608_v17  ;;  %v1640_v32 = vmul.f32 %v513_v28, %v1610_v18  ;;  %v516_v34 = vstv %s1096_s24  ;;  %v1648_v36 = vld [vmem:[#allocation2 + $0x48] sm:$0xff]  ;;  %s1655_s21 = spop %1097 }
  0xe4   : > { %v1642_v33 = vld [vmem:[#allocation2 + $0x49] sm:$0xff]  ;;  %402 = vrot.lane.b32.xlu0 %v382_v25, %s1323_s9  ;;  %v1646_v35 = vmul.f32 %v336_v14, %v1599_v11  ;;  %v1650_v37 = vld [vmem:[#allocation2 + $0x51] sm:$0xff]  ;;  %s1661_s22 = spop %1099  ;;  %v385_v41 = vmul.f32 %v376_v39, %v1634_v30  ;;  %v384_v43 = vmul.f32 %v376_v39, %v1648_v36  ;;  %v451_v58 = vmul.f32 %v441_v49, %v1601_v12 }
  0xe5   : > { %v1653_v38 = vmul.f32 %v516_v34, %v1642_v33  ;;  %v1659_v40 = vmul.f32 %v516_v34, %v1650_v37  ;;  %s1665_s23 = spop %1101  ;;  %v450_v2 = vmul.f32 %v441_v49, %v1599_v11  ;;  %v1722_v5 = vld [vmem:[#allocation2 + $0x4a] sm:$0xff]  ;;  %v1724_v6 = vld [vmem:[#allocation2 + $0x52] sm:$0xff]  ;;  %v444_v11 = vstv %s1594_s8 }
  0xe6   : > { %s1669_s10 = spop %1103  ;;  %v453_v14 = vmul.f32 %v444_v11, %v1634_v30  ;;  %v452_v16 = vmul.f32 %v444_v11, %v1648_v36  ;;  %v543_v19 = vstv %s1655_s21  ;;  %v546_v28 = vstv %s1661_s22 }
  0xe7   : > { %408 = vrot.lane.b32.xlu1 %v385_v41, %s1323_s9  ;;  %v555_v24 = vmul.f32 %v543_v19, %v1606_v15  ;;  %v554_v25 = vmul.f32 %v543_v19, %v1603_v13  ;;  %v557_v34 = vmul.f32 %v546_v28, %v1621_v23  ;;  %v556_v39 = vmul.f32 %v546_v28, %v1619_v22 }
  0xe8   : > { %406 = vrot.lane.b32.xlu0 %v384_v43, %s1323_s9  ;;  %v549_v41 = vstv %s1665_s23 }
  0xe9   : > { %s1673_s30 = spop %1105  ;;  %v559_v42 = vmul.f32 %v549_v41, %v1610_v18  ;;  %v558_v43 = vmul.f32 %v549_v41, %v1608_v17 }
  0xea   : > { %s1677_s4 = spop %1107 }
  0xeb   : > { %464 = vrot.lane.b32.xlu1 %v447_v44, %s1324_s19  ;;  %v552_v44 = vstv %s1669_s10 }
  0xec   : > { %462 = vrot.lane.b32.xlu0 %v446_v45, %s1324_s19  ;;  %v561_v45 = vmul.f32 %v552_v44, %v1650_v37  ;;  %v560_v46 = vmul.f32 %v552_v44, %v1642_v33 }
  0xed   : > { %s1681_s5 = spop %1109 }
  0xee   : > { %s1684_s11 = spop %1111 }
  0xef   : > { %s1114_s24 = spop %1113  ;;  %468 = vrot.lane.b32.xlu1 %v449_v47, %s1324_s19  ;;  %v611_v47 = vstv %s1673_s30 }
  0xf0   : > { %v683_v52 = vstv %s1114_s24  ;;  %s1116_s6 = spop %1115  ;;  %466 = vrot.lane.b32.xlu0 %v448_v48, %s1324_s19  ;;  %v623_v48 = vmul.f32 %v611_v47, %v1606_v15  ;;  %v622_v49 = vmul.f32 %v611_v47, %v1603_v13 }
  0xf1   : > { %v1694_v53 = vmul.f32 %v683_v52, %v1688_v50  ;;  %v1697_v54 = vmul.f32 %v683_v52, %v1690_v51  ;;  %v686_v57 = vstv %s1116_s6  ;;  %s1118_s7 = spop %1117  ;;  %v614_v52 = vstv %s1677_s4 }
  0xf2   : > { %v1706_v59 = vmul.f32 %v686_v57, %v1699_v55  ;;  %v1709_v62 = vmul.f32 %v686_v57, %v1701_v56  ;;  %v689_v1 = vstv %s1118_s7  ;;  %s1120_s24 = spop %1119  ;;  %v625_v57 = vmul.f32 %v614_v52, %v1621_v23 }
  0xf3   : > { %v1717_v3 = vmul.f32 %v689_v1, %v1711_v63  ;;  %v1720_v4 = vmul.f32 %v689_v1, %v1713_v0  ;;  %v692_v7 = vstv %s1120_s24  ;;  %472 = vrot.lane.b32.xlu1 %v451_v58, %s1324_s19  ;;  %v624_v58 = vmul.f32 %v614_v52, %v1619_v22  ;;  %s1122_s8 = spop %1121  ;;  %s1328_s24 = smov [#allocation6]  }
  0xf4   : > { %v1727_v10 = vmul.f32 %v692_v7, %v1722_v5  ;;  %v1730_v12 = vmul.f32 %v692_v7, %v1724_v6  ;;  %470 = vrot.lane.b32.xlu0 %v450_v2, %s1324_s19  ;;  %v617_v1 = vstv %s1681_s5  ;;  %v620_v7 = vstv %s1684_s11  ;;  %s1124_s21 = spop %1123 }
  0xf5   : > { %v627_v2 = vmul.f32 %v617_v1, %v1610_v18  ;;  %v626_v15 = vmul.f32 %v617_v1, %v1608_v17  ;;  %v629_v13 = vmul.f32 %v620_v7, %v1650_v37  ;;  %v628_v23 = vmul.f32 %v620_v7, %v1642_v33  ;;  %s1126_s22 = spop %1125 }
  0xf6   : > { %v719_v22 = vstv %s1122_s8  ;;  %v722_v11 = vstv %s1124_s21  ;;  %s1128_s23 = spop %1127  ;;  %s1242_s8 = sshll.u32 %s1328_s24, 4  ;;  %s1243_s8 = int_to_ptr.vmem [resolvable:$false] %s1242_s8 }
  0xf7   : > { %476 = vrot.lane.b32.xlu1 %v453_v14, %s1324_s19  ;;  %v730_v18 = vmul.f32 %v719_v22, %v1688_v50  ;;  %v731_v17 = vmul.f32 %v719_v22, %v1690_v51  ;;  %v732_v37 = vmul.f32 %v722_v11, %v1699_v55  ;;  %v733_v33 = vmul.f32 %v722_v11, %v1701_v56  ;;  %s1244_s21 = scalar_lea.vmem %s1243_s8, 2048 }
  0xf8   : > { %474 = vrot.lane.b32.xlu0 %v452_v16, %s1324_s19  ;;  %v725_v14 = vstv %s1126_s22  ;;  %v340_v22 = vstv %s1549_s18 }
  0xf9   : > { %v734_v16 = vmul.f32 %v725_v14, %v1711_v63  ;;  %v735_v19 = vmul.f32 %v725_v14, %v1713_v0  ;;  %s1130_s10 = spop %1129 }
  0xfa   : > { %s1132_s30 = spop %1131 }
  0xfb   : > { %572 = vrot.lane.b32.xlu1 %v555_v24, %s1323_s9  ;;  %v728_v24 = vstv %s1128_s23 }
  0xfc   : > { %570 = vrot.lane.b32.xlu0 %v554_v25, %s1323_s9  ;;  %v736_v25 = vmul.f32 %v728_v24, %v1722_v5  ;;  %v737_v28 = vmul.f32 %v728_v24, %v1724_v6 }
  0xfd   : > { %s1134_s4 = spop %1133 }
  0xfe   : > { %s1136_s5 = spop %1135 }
  0xff   : > { %576 = vrot.lane.b32.xlu1 %v557_v34, %s1323_s9  ;;  %v787_v34 = vstv %s1130_s10 }
 0x100   : > { %574 = vrot.lane.b32.xlu0 %v556_v39, %s1323_s9  ;;  %v798_v39 = vmul.f32 %v787_v34, %v1688_v50  ;;  %v799_v41 = vmul.f32 %v787_v34, %v1690_v51 }
 0x103   : > { %580 = vrot.lane.b32.xlu1 %v559_v42, %s1323_s9  ;;  %v790_v42 = vstv %s1132_s30 }
 0x104   : > { %578 = vrot.lane.b32.xlu0 %v558_v43, %s1323_s9  ;;  %v800_v43 = vmul.f32 %v790_v42, %v1699_v55  ;;  %v801_v44 = vmul.f32 %v790_v42, %v1701_v56  ;;  %v1811_v56 = vpop.permute.xlu1 %875 }
 0x107   : > { %584 = vrot.lane.b32.xlu1 %v561_v45, %s1323_s9  ;;  %v793_v45 = vstv %s1134_s4 }
 0x108   : > { %582 = vrot.lane.b32.xlu0 %v560_v46, %s1323_s9  ;;  %v802_v50 = vmul.f32 %v793_v45, %v1711_v63  ;;  %v803_v51 = vmul.f32 %v793_v45, %v1713_v0  ;;  %v796_v46 = vstv %s1136_s5  ;;  %v1815_v63 = vpop.permute.xlu1 %879 }
 0x109   : > { %v804_v47 = vmul.f32 %v796_v46, %v1722_v5  ;;  %v805_v55 = vmul.f32 %v796_v46, %v1724_v6 }
 0x10b   : > { %640 = vrot.lane.b32.xlu1 %v623_v48, %s1324_s19  ;;  %v1813_v48 = vpop.permute.xlu0 %871 }
 0x10c   : > { %638 = vrot.lane.b32.xlu0 %v622_v49, %s1324_s19 }
 0x10f   : > { %644 = vrot.lane.b32.xlu1 %v625_v57, %s1324_s19  ;;  %v1817_v0 = vpop.permute.xlu0 %883 }
 0x110   : > { %642 = vrot.lane.b32.xlu0 %v624_v58, %s1324_s19 }
 0x113   : > { %648 = vrot.lane.b32.xlu1 %v627_v2, %s1324_s19 }
 0x114   : > { %646 = vrot.lane.b32.xlu0 %v626_v15, %s1324_s19 }
 0x117   : > { %652 = vrot.lane.b32.xlu1 %v629_v13, %s1324_s19 }
 0x118   : > { %650 = vrot.lane.b32.xlu0 %v628_v23, %s1324_s19 }
 0x11b   : > { %746 = vrot.lane.b32.xlu1 %v730_v18, %s1323_s9  ;;  %v349_v18 = vmul.f32 %v340_v22, %v1634_v30 }
 0x11c   : > { %748 = vrot.lane.b32.xlu0 %v731_v17, %s1323_s9 }
 0x11f   : > { %750 = vrot.lane.b32.xlu1 %v732_v37, %s1323_s9 }
 0x120   : > { %752 = vrot.lane.b32.xlu0 %v733_v33, %s1323_s9 }
 0x123   : > { %754 = vrot.lane.b32.xlu1 %v734_v16, %s1323_s9 }
 0x124   : > { %756 = vrot.lane.b32.xlu0 %v735_v19, %s1323_s9 }
 0x127   : > { %758 = vrot.lane.b32.xlu1 %v736_v25, %s1323_s9 }
 0x128   : > { %760 = vrot.lane.b32.xlu0 %v737_v28, %s1323_s9  ;;  %s1848_s9 = scalar_lea.vmem [#allocation6], %s1052_s29  ;;  %s1064_s29 = sshll.u32 %s1310_s15, 10 }
 0x129   : > { %s1873_s6 = scalar_lea.hbm %s1930_s3, %s1064_s29  ;;  %s912_s15 = scalar_lea.sflag [#allocation5], %s1435_s28 }
 0x12b   : > { %814 = vrot.lane.b32.xlu1 %v798_v39, %s1324_s19 }
 0x12c   : > { %816 = vrot.lane.b32.xlu0 %v799_v41, %s1324_s19 }
 0x12f   : > { %818 = vrot.lane.b32.xlu1 %v800_v43, %s1324_s19 }
 0x130   : > { %820 = vrot.lane.b32.xlu0 %v801_v44, %s1324_s19 }
 0x133   : > { %822 = vrot.lane.b32.xlu1 %v802_v50, %s1324_s19 }
 0x134   : > { %824 = vrot.lane.b32.xlu0 %v803_v51, %s1324_s19 }
 0x137   : > { %826 = vrot.lane.b32.xlu1 %v804_v47, %s1324_s19 }
 0x138   : > { %828 = vrot.lane.b32.xlu0 %v805_v55, %s1324_s19  ;;  %s928_s19 = sshll.u32 %s1848_s9, 4  ;;  %s1875_s19 = int_to_ptr.vmem [resolvable:$true] %s928_s19 }
 0x139   : > { %s1238_s7 = scalar_lea.vmem %s1875_s19, 1024  ;;  %p1245_p1 = scmp.lt.s32.totalorder %s1875_s19, %s1243_s8 }
 0x13a   : > { %p1239_p8 = scmp.ne.s32.totalorder %s1875_s19, %s1238_s7  ;;  %p1246_p3 = scmp.lt.s32.totalorder %s1244_s21, %s1238_s7 }
 0x13c   : > { %p1240_p12 = pnand %p1239_p8, %p1402_p9  ;;  %p1247_p5 = por %p1246_p3, %p1245_p1 }
 0x13e   : > { %p1241_p0 = pneg %p1240_p12 }
 0x140   : > { %p1248_p6 = pnand %p1247_p5, %p1241_p0 }
 0x14c   : > { %v397_v49 = vpop.permute.xlu1 %396  ;;  %v395_v52 = vpop.permute.xlu0 %394 }
 0x14d   : > { %v419_v57 = vadd.f32 %v397_v49, %v1563_v61  ;;  %v418_v5 = vadd.f32 %v395_v52, %v1560_v60  ;;  %v348_v61 = vmul.f32 %v340_v22, %v1648_v36 }
 0x150   : > { %v401_v6 = vpop.permute.xlu1 %400  ;;  %v399_v58 = vpop.permute.xlu0 %398 }
 0x151   : > { %v421_v1 = vadd.f32 %v401_v6, %v1589_v8  ;;  %v420_v2 = vadd.f32 %v399_v58, %v1592_v9 }
 0x155   : > { %v405_v15 = vpop.permute.xlu1 %404 }
 0x156   : > { %v423_v7 = vadd.f32 %v405_v15, %v1632_v29  ;;  %v403_v13 = vpop.permute.xlu0 %402 }
 0x157   : > { %v422_v23 = vadd.f32 %v403_v13, %v1646_v35 }
 0x159   : > { %v409_v17 = vpop.permute.xlu1 %408 }
 0x15a   : > { %v425_v11 = vadd.f32 %v409_v17, %v349_v18  ;;  %v407_v60 = vpop.permute.xlu0 %406 }
 0x15b   : > { %v424_v37 = vadd.f32 %v407_v60, %v348_v61 }
 0x15d   : > { %v465_v33 = vpop.permute.xlu1 %464 }
 0x15e   : > { %v487_v14 = vadd.f32 %v465_v33, %v419_v57  ;;  %v463_v8 = vpop.permute.xlu0 %462 }
 0x15f   : > { %v486_v16 = vadd.f32 %v463_v8, %v418_v5 }
 0x160   : > { %v527_v9 = vadd.f32 %v1617_v21, %v487_v14 }
 0x161   : > { %v469_v19 = vpop.permute.xlu1 %468  ;;  %v526_v29 = vadd.f32 %v1614_v20, %v486_v16 }
 0x162   : > { %v489_v24 = vadd.f32 %v469_v19, %v421_v1  ;;  %v467_v35 = vpop.permute.xlu0 %466 }
 0x163   : > { %v488_v25 = vadd.f32 %v467_v35, %v420_v2 }
 0x164   : > { %v529_v30 = vadd.f32 %v1628_v27, %v489_v24 }
 0x165   : > { %v473_v28 = vpop.permute.xlu1 %472  ;;  %v528_v36 = vadd.f32 %v1625_v26, %v488_v25 }
 0x166   : > { %v491_v34 = vadd.f32 %v473_v28, %v423_v7  ;;  %v471_v39 = vpop.permute.xlu0 %470 }
 0x167   : > { %v490_v41 = vadd.f32 %v471_v39, %v422_v23 }
 0x168   : > { %v531_v42 = vadd.f32 %v1640_v32, %v491_v34 }
 0x169   : > { %v477_v43 = vpop.permute.xlu1 %476  ;;  %v530_v44 = vadd.f32 %v1637_v31, %v490_v41 }
 0x16a   : > { %v493_v21 = vadd.f32 %v477_v43, %v425_v11  ;;  %v475_v45 = vpop.permute.xlu0 %474 }
 0x16b   : > { %v492_v50 = vadd.f32 %v475_v45, %v424_v37 }
 0x16c   : > { %v533_v20 = vadd.f32 %v1659_v40, %v493_v21 }
 0x16d   : > { %v573_v51 = vpop.permute.xlu1 %572  ;;  %v532_v46 = vadd.f32 %v1653_v38, %v492_v50 }
 0x16e   : > { %v571_v27 = vpop.permute.xlu0 %570  ;;  %v595_v5 = vadd.f32 %v573_v51, %v527_v9 }
 0x16f   : > { %v594_v32 = vadd.f32 %v571_v27, %v526_v29 }
 0x171   : > { %v577_v47 = vpop.permute.xlu1 %576 }
 0x172   : > { %v575_v55 = vpop.permute.xlu0 %574  ;;  %v597_v2 = vadd.f32 %v577_v47, %v529_v30 }
 0x173   : > { %v596_v40 = vadd.f32 %v575_v55, %v528_v36 }
 0x175   : > { %v581_v26 = vpop.permute.xlu1 %580 }
 0x176   : > { %v579_v49 = vpop.permute.xlu0 %578  ;;  %v599_v18 = vadd.f32 %v581_v26, %v531_v42 }
 0x177   : > { %v598_v61 = vadd.f32 %v579_v49, %v530_v44 }
 0x179   : > { %v585_v52 = vpop.permute.xlu1 %584 }
 0x17a   : > { %v583_v57 = vpop.permute.xlu0 %582  ;;  %v601_v8 = vadd.f32 %v585_v52, %v533_v20 }
 0x17b   : > { %v600_v16 = vadd.f32 %v583_v57, %v532_v46 }
 0x17d   : > { %v641_v6 = vpop.permute.xlu1 %640 }
 0x17e   : > { %v663_v58 = vadd.f32 %v641_v6, %v595_v5  ;;  %v639_v31 = vpop.permute.xlu0 %638 }
 0x17f   : > { %v662_v1 = vadd.f32 %v639_v31, %v594_v32 }
 0x180   : > { %v703_v15 = vadd.f32 %v1697_v54, %v663_v58 }
 0x181   : > { %v645_v7 = vpop.permute.xlu1 %644  ;;  %v702_v38 = vadd.f32 %v1694_v53, %v662_v1 }
 0x182   : > { %v665_v13 = vadd.f32 %v645_v7, %v597_v2  ;;  %v643_v23 = vpop.permute.xlu0 %642 }
 0x183   : > { %v664_v22 = vadd.f32 %v643_v23, %v596_v40 }
 0x184   : > { %v705_v17 = vadd.f32 %v1709_v62, %v665_v13 }
 0x185   : > { %v649_v11 = vpop.permute.xlu1 %648  ;;  %v704_v60 = vadd.f32 %v1706_v59, %v664_v22 }
 0x186   : > { %v667_v37 = vadd.f32 %v649_v11, %v599_v18  ;;  %v647_v33 = vpop.permute.xlu0 %646 }
 0x187   : > { %v666_v14 = vadd.f32 %v647_v33, %v598_v61 }
 0x188   : > { %v707_v54 = vadd.f32 %v1720_v4, %v667_v37 }
 0x189   : > { %v653_v9 = vpop.permute.xlu1 %652  ;;  %v706_v53 = vadd.f32 %v1717_v3, %v666_v14 }
 0x18a   : > { %v669_v19 = vadd.f32 %v653_v9, %v601_v8  ;;  %v651_v29 = vpop.permute.xlu0 %650 }
 0x18b   : > { %v668_v24 = vadd.f32 %v651_v29, %v600_v16 }
 0x18c   : > { %v709_v35 = vadd.f32 %v1730_v12, %v669_v19 }
 0x18d   : > { %v747_v62 = vpop.permute.xlu1 %746  ;;  %v708_v25 = vadd.f32 %v1727_v10, %v668_v24 }
 0x18e   : > { %v749_v30 = vpop.permute.xlu0 %748  ;;  %v770_v4 = vadd.f32 %v747_v62, %v702_v38 }
 0x18f   : > { %v771_v42 = vadd.f32 %v749_v30, %v703_v15 }
 0x191   : > { %v751_v59 = vpop.permute.xlu1 %750 }
 0x192   : > { %v753_v28 = vpop.permute.xlu0 %752  ;;  %v772_v45 = vadd.f32 %v751_v59, %v704_v60 }
 0x193   : > { %v773_v50 = vadd.f32 %v753_v28, %v705_v17 }
 0x195   : > { %v755_v36 = vpop.permute.xlu1 %754 }
 0x196   : > { %v757_v34 = vpop.permute.xlu0 %756  ;;  %v774_v26 = vadd.f32 %v755_v36, %v706_v53 }
 0x197   : > { %v775_v52 = vadd.f32 %v757_v34, %v707_v54 }
 0x199   : > { %v759_v39 = vpop.permute.xlu1 %758 }
 0x19a   : > { %v761_v41 = vpop.permute.xlu0 %760  ;;  %v776_v1 = vadd.f32 %v759_v39, %v708_v25 }
 0x19b   : > { %v777_v15 = vadd.f32 %v761_v41, %v709_v35 }
 0x19d   : > { %v815_v43 = vpop.permute.xlu1 %814 }
 0x19e   : > { %v838_v3 = vadd.f32 %v815_v43, %v770_v4  ;;  %v817_v44 = vpop.permute.xlu0 %816 }
 0x19f   : > { %v839_v21 = vadd.f32 %v817_v44, %v771_v42 }
 0x1a0   : > { %v886_v12 = vadd.f32 %v1813_v48, %v838_v3 }
 0x1a1   : > { %v887_v10 = vadd.f32 %v1813_v48, %v839_v21  ;;  %v819_v20 = vpop.permute.xlu1 %818 }
 0x1a2   : > { %v894_v51 = vmax.f32 %v886_v12, 0.0  ;;  %v840_v46 = vadd.f32 %v819_v20, %v772_v45  ;;  %v821_v27 = vpop.permute.xlu0 %820 }
 0x1a3   : > { %v895_v47 = vmax.f32 %v887_v10, 0.0  ;;  %v841_v55 = vadd.f32 %v821_v27, %v773_v50 }
 0x1a4   : > { %903 = vst.msk [vmem:[%s1848_s9] sm:$0xff] %vm902_vm3, %v894_v51  ;;  %v888_v49 = vadd.f32 %v1811_v56, %v840_v46 }
 0x1a5   : > { %904 = vst.msk [vmem:[%s1848_s9 + $0x8] sm:$0xff] %vm902_vm3, %v895_v47  ;;  %v889_v48 = vadd.f32 %v1811_v56, %v841_v55  ;;  %v823_v57 = vpop.permute.xlu1 %822 }
 0x1a6   : > { %v896_v5 = vmax.f32 %v888_v49, 0.0  ;;  %v842_v32 = vadd.f32 %v823_v57, %v774_v26  ;;  %v825_v6 = vpop.permute.xlu0 %824 }
 0x1a7   : > { %v897_v58 = vmax.f32 %v889_v48, 0.0  ;;  %v843_v31 = vadd.f32 %v825_v6, %v775_v52 }
 0x1a8   : > { %905 = vst.msk [vmem:[%s1848_s9 + $0x10] sm:$0xff] %vm902_vm3, %v896_v5  ;;  %v890_v2 = vadd.f32 %v1815_v63, %v842_v32 }
 0x1a9   : > { %906 = vst.msk [vmem:[%s1848_s9 + $0x18] sm:$0xff] %vm902_vm3, %v897_v58  ;;  %v891_v56 = vadd.f32 %v1815_v63, %v843_v31  ;;  %v827_v40 = vpop.permute.xlu1 %826 }
 0x1aa   : > { %v898_v7 = vmax.f32 %v890_v2, 0.0  ;;  %v844_v38 = vadd.f32 %v827_v40, %v776_v1  ;;  %v829_v13 = vpop.permute.xlu0 %828 }
 0x1ab   : > { %v899_v23 = vmax.f32 %v891_v56, 0.0  ;;  %v845_v22 = vadd.f32 %v829_v13, %v777_v15 }
 0x1ac   : > { %907 = vst.msk [vmem:[%s1848_s9 + $0x20] sm:$0xff] %vm902_vm3, %v898_v7  ;;  %v892_v18 = vadd.f32 %v1817_v0, %v844_v38 }
 0x1ad   : > { %908 = vst.msk [vmem:[%s1848_s9 + $0x28] sm:$0xff] %vm902_vm3, %v899_v23  ;;  %v893_v63 = vadd.f32 %v1817_v0, %v845_v22 }
 0x1ae   : > { %v900_v17 = vmax.f32 %v892_v18, 0.0 }
 0x1af   : > { %v901_v61 = vmax.f32 %v893_v63, 0.0 }
 0x1b0   : > { %909 = vst.msk [vmem:[%s1848_s9 + $0x30] sm:$0xff] %vm902_vm3, %v900_v17 }
 0x1b1   : > { %910 = vst.msk [vmem:[%s1848_s9 + $0x38] sm:$0xff] %vm902_vm3, %v901_v61 }
 0x1b2   : > { %1251 = shalt.err (!%p1248_p6)
}
 0x1b3   : > { %s1252_s22 = scalar_lea.hbm %s1873_s6, 1024  ;;  %s1256_s30 = scalar_lea.hbm %s1930_s3, 2048 }
 0x1b4   : > { %p1253_p7 = scmp.ne.s32.totalorder %s1873_s6, %s1252_s22  ;;  %p1257_p13 = scmp.lt.s32.totalorder %s1873_s6, %s1930_s3 }
 0x1b5   : > { %p1258_p2 = scmp.lt.s32.totalorder %s1256_s30, %s1252_s22 }
 0x1b6   : > { %p1254_p10 = pnand %p1253_p7, %p1402_p9 }
 0x1b7   : > { %p1259_p8 = por %p1258_p2, %p1257_p13 }
 0x1b8   : > { %p1255_p4 = pneg %p1254_p10 }
 0x1ba   : > { %p1260_p12 = pnand %p1259_p8, %p1255_p4 }
 0x1bc   : > { %1263 = shalt.err (!%p1260_p12)
}
 0x1bd   : > { %s1329_s9 = smov 128   ;;  %s1330_s29 = smov 8  }
 0x1be   : > { %1139 = dma.vmem_to_hbm [thread:$0]  (%p1402_p9), %s1875_s19, 1024, %s1873_s6, %s912_s15, %s1329_s9, %s1329_s9, %s1330_s29  }
 0x1bf PF: > { %s943_s18 = sand.u32 1, %s1298_s12   ;;  %p1936_p0 = scmp.ge.s32.totalorder %s1318_s17, 2 }
 0x1c0   : > { %s944_s11 = scalar_lea.sflag [#allocation5], %s943_s18 }
 0x1c1   : > { %p1146_p1 = pnand %p1936_p0, %p1409_p11 }
 0x1c3   : > { %p1147_p3 = pneg %p1146_p1 }
 0x1c5   : > { %1293 = dma.done.wait (%p1147_p3), %s944_s11, 1024  }
 0x1c6   : > { %1295 = vsyncadd (%p1147_p3), %s944_s11, 4294966272  ;;  %s19_s17 = sadd.s32 1, %s1318_s17   ;;  %s1937_s12 = smov %s1302_s13 }
 0x1c7   : > { %p16_p5 = scmp.ge.s32.totalorder %s19_s17, 4   ;;  %s1938_s13 = smov %s1306_s14 }
 0x1c8   : > { %s1939_s14 = smov %s1407_s26  ;;  %s1940_s15 = smov %s1314_s16 }
 0x1c9   : > { %s1941_s16 = smov %s1943_s20  ;;  %18 = sbr.rel (!%p16_p5) target bundleno = 6 (0x6), region = 83 }
 0x1ce   :  { %949 = vsyncpa [#allocation4], 1 }
 0x1cf   :  { %951 = vsyncpa [#allocation4 + $0x1], 1 }
 0x1d0   :  { %952 = vsyncpa [#allocation5], 1 }
 0x1d1   :  { %954 = vsyncpa [#allocation5 + $0x1], 1 }

</bundles_post_ra>
